<compile_context>
chip_gen: v7x
topology: tpu7x:2x2x1
jax: 0.10.0
libtpu: 0.0.40
codegen_flags: <defaults>
</compile_context>

<pallas_src>
import jax
import jax.numpy as jnp
from jax.experimental import pallas as pl
from jax.experimental.pallas import tpu as pltpu


def _combiner_kernel(x_ref, w1t_ref, b1_ref, w2t_ref, b2_ref, o_ref):
    # x_ref / o_ref: (Nb, C4, T) tile; channels on sublanes, spatial on lanes.
    w1t = w1t_ref[...]                      # (Cb, C4), BN1 scale folded in
    b1 = b1_ref[...]                        # (Cb, 1)
    w2t = w2t_ref[...]                      # (C4, Cb), BN2 scale folded in
    b2 = b2_ref[...]                        # (C4, 1)
    mm_dtype = w1t.dtype                    # f32 by default; bf16 if requested

    nb = x_ref.shape[0]
    for b in range(nb):                     # small static unroll over batch slab
        # conv1 (1x1) + bias + ReLU (drop1: identity in eval mode)
        h = jnp.dot(w1t, x_ref[b].astype(mm_dtype),
                    preferred_element_type=jnp.float32)           # (Cb, T)
        h = jnp.maximum(h + b1, 0.0)

        # conv2 (1x1) + bias
        y = jnp.dot(w2t, h.astype(mm_dtype),
                    preferred_element_type=jnp.float32)           # (C4, T)
        y = y + b2

        # residual add + ReLU (drop2: identity in eval mode).
        # Re-read the input block here instead of holding the earlier value
        # live across both matmuls (lower VMEM/vreg pressure).
        o_ref[b] = jnp.maximum(x_ref[b].astype(jnp.float32) + y, 0.0).astype(o_ref.dtype)


def multi_scale_combiner(x_nchw, w1, bn1, w2, bn2, *, hw_tile=8192, matmul_dtype=None):
    """x_nchw: (N, 4*V, H, W) float32.
    w1: (C4, Cb), w2: (Cb, C4)  -- 1x1 conv weights in right-matmul form.
    bn1/bn2: dicts with gamma, beta, mean, var (per output channel, eval stats).
    matmul_dtype: optional narrower dtype (e.g. jnp.bfloat16) for the matmul
    operands only; accumulation, bias, residual stay f32."""
    N, C4, H, W = x_nchw.shape
    Cb = w1.shape[1]
    eps = 1e-5
    mm_dtype = jnp.float32 if matmul_dtype is None else matmul_dtype

    # Fold BatchNorm (running-stat / eval form) into per-channel scale & bias,
    # then fold the scale into the conv weights (column scaling commutes
    # through the matmul).  Kernel only does the bias adds.
    s1 = bn1["gamma"] * jax.lax.rsqrt(bn1["var"] + eps)
    b1 = bn1["beta"] - bn1["mean"] * s1
    s2 = bn2["gamma"] * jax.lax.rsqrt(bn2["var"] + eps)
    b2 = bn2["beta"] - bn2["mean"] * s2

    w1t = (w1 * s1[None, :]).T.astype(mm_dtype)      # (Cb, C4)  h = w1t @ x
    w2t = (w2 * s2[None, :]).T.astype(mm_dtype)      # (C4, Cb)  y = w2t @ h
    b1c = b1.reshape(Cb, 1).astype(jnp.float32)
    b2c = b2.reshape(C4, 1).astype(jnp.float32)

    # NCHW -> (N, C4, H*W): pure reshape, no transpose / extra HBM pass.
    HW = H * W
    x3 = x_nchw.reshape(N, C4, HW)

    # Tile selection: minimize padded work, keep the lane dim a multiple of
    # 128 (unmasked stores).  No jnp.pad / output slice — the ragged tail is a
    # Pallas partial block (harmless: purely column-wise compute, OOB output
    # writes are masked).
    hw_tile = max(128, (hw_tile // 128) * 128)
    ntiles = pl.cdiv(HW, hw_tile)
    tile = pl.cdiv(pl.cdiv(HW, ntiles), 128) * 128

    # If the per-sample spatial slab is small, fold several batch elements
    # into one block so each grid step moves more bytes.
    per_sample_bytes = C4 * HW * 4
    if per_sample_bytes <= 256 * 1024:
        Nb = min(N, max(1, (2 * 1024 * 1024) // max(per_sample_bytes, 1)))
        Nb = min(Nb, 8)          # keep the in-kernel unroll small
    else:
        Nb = 1

    grid = (pl.cdiv(N, Nb), ntiles)

    # Scoped-VMEM budget: double-buffered in/out blocks + h intermediate +
    # margin.  Explicit so large tiles also fit under v5e's 16 MiB default;
    # capped well below v7x's 64 MiB physical VMEM.
    block_in_bytes = Nb * C4 * tile * 4
    block_h_bytes = Nb * Cb * tile * 4
    vmem_need = 4 * block_in_bytes + 2 * block_h_bytes + (4 << 20)
    vmem_limit = int(min(56 * 1024 * 1024, max(vmem_need, 32 * 1024 * 1024)))

    cost = pl.CostEstimate(
        flops=4 * C4 * Cb * HW * N,
        transcendentals=0,
        bytes_accessed=2 * N * C4 * HW * 4 + 2 * C4 * Cb * 4 + (C4 + Cb) * 4,
    )

    out3 = pl.pallas_call(
        _combiner_kernel,
        out_shape=jax.ShapeDtypeStruct((N, C4, HW), x_nchw.dtype),
        grid_spec=pltpu.PrefetchScalarGridSpec(
            num_scalar_prefetch=0,
            grid=grid,
            in_specs=[
                pl.BlockSpec((Nb, C4, tile), lambda n, j: (n, 0, j)),  # x tile
                pl.BlockSpec((Cb, C4), lambda n, j: (0, 0)),           # w1t (scale-folded)
                pl.BlockSpec((Cb, 1), lambda n, j: (0, 0)),            # bias1
                pl.BlockSpec((C4, Cb), lambda n, j: (0, 0)),           # w2t (scale-folded)
                pl.BlockSpec((C4, 1), lambda n, j: (0, 0)),            # bias2
            ],
            out_specs=pl.BlockSpec((Nb, C4, tile), lambda n, j: (n, 0, j)),
        ),
        compiler_params=pltpu.CompilerParams(
            dimension_semantics=("parallel", "parallel"),
            vmem_limit_bytes=vmem_limit,
        ),
        cost_estimate=cost,
    )(x3, w1t, b1c, w2t, b2c)

    return out3.reshape(N, C4, H, W)


def _reference(x_nchw, w1, bn1, w2, bn2):
    """Pure-JAX reference (eval-mode PyTorch semantics) for sanity checking."""
    eps = 1e-5
    N, C4, H, W = x_nchw.shape
    x = jnp.transpose(x_nchw, (0, 2, 3, 1)).reshape(-1, C4)
    s1 = bn1["gamma"] / jnp.sqrt(bn1["var"] + eps)
    b1 = bn1["beta"] - bn1["mean"] * s1
    s2 = bn2["gamma"] / jnp.sqrt(bn2["var"] + eps)
    b2 = bn2["beta"] - bn2["mean"] * s2
    h = jnp.maximum((x @ w1) * s1 + b1, 0.0)
    y = (h @ w2) * s2 + b2
    out = jnp.maximum(x + y, 0.0)
    return jnp.transpose(out.reshape(N, H, W, C4), (0, 3, 1, 2))


if __name__ == "__main__":
    # Small shapes consistent with the module: vision_dim=8 -> in/out channels
    # = 4*vision_dim = 32, bottleneck = 16, batch=2, spatial 16x16.
    vision_dim = 8
    bottle_dim = 16
    C4 = 4 * vision_dim
    N, H, W = 2, 16, 16

    key = jax.random.PRNGKey(0)
    kx, kw1, kw2 = jax.random.split(key, 3)

    x = jax.random.normal(kx, (N, C4, H, W), dtype=jnp.float32)

    # Conv weights (PyTorch conv weight shape is (out, in, 1, 1)); stored in
    # right-matmul form: w1 (C4, Cb), w2 (Cb, C4).
    w1 = jax.random.normal(kw1, (C4, bottle_dim), dtype=jnp.float32) * (1.0 / jnp.sqrt(C4))
    w2 = jax.random.normal(kw2, (bottle_dim, C4), dtype=jnp.float32) * (1.0 / jnp.sqrt(bottle_dim))

    # Deterministic, slightly non-trivial BatchNorm parameters / running stats.
    bn1 = dict(
        gamma=1.0 + 0.1 * jnp.arange(bottle_dim, dtype=jnp.float32) / bottle_dim,
        beta=0.01 * jnp.arange(bottle_dim, dtype=jnp.float32),
        mean=0.05 * jnp.ones((bottle_dim,), jnp.float32),
        var=1.0 + 0.2 * jnp.arange(bottle_dim, dtype=jnp.float32) / bottle_dim,
    )
    bn2 = dict(
        gamma=1.0 + 0.1 * jnp.arange(C4, dtype=jnp.float32) / C4,
        beta=0.01 * jnp.arange(C4, dtype=jnp.float32),
        mean=0.05 * jnp.ones((C4,), jnp.float32),
        var=1.0 + 0.2 * jnp.arange(C4, dtype=jnp.float32) / C4,
    )

    out = multi_scale_combiner(x, w1, bn1, w2, bn2)
    out = jax.block_until_ready(out)

    ref = _reference(x, w1, bn1, w2, bn2)
    assert out.shape == (N, C4, H, W)
    assert jnp.allclose(out, ref, atol=1e-4, rtol=1e-4)

    print("KERNEL_OK")
</pallas_src>

<mosaic_0001>
module attributes {stable_mosaic.version = 11 : i64} {
  func.func @_combiner_kernel(%arg0: i32, %arg1: i32, %arg2: memref<2x32x256xf32, #tpu.memory_space<vmem>>, %arg3: memref<16x32xf32, #tpu.memory_space<vmem>>, %arg4: memref<16x1xf32, #tpu.memory_space<vmem>>, %arg5: memref<32x16xf32, #tpu.memory_space<vmem>>, %arg6: memref<32x1xf32, #tpu.memory_space<vmem>>, %arg7: memref<2x32x256xf32, #tpu.memory_space<vmem>>) attributes {dimension_semantics = [#tpu.dimension_semantics<parallel>, #tpu.dimension_semantics<parallel>], iteration_bounds = array<i64: 1, 1>, scalar_prefetch = 0 : i64, scratch_operands = 0 : i64, tpu.core_type = #tpu.core_type<tc>, window_params = [{transform_indices = @transform_0, window_bounds = array<i64: 2, 32, 256>}, {pipeline_mode = #tpu.pipeline_mode<synchronous>, transform_indices = @transform_1, window_bounds = array<i64: 16, 32>}, {pipeline_mode = #tpu.pipeline_mode<synchronous>, transform_indices = @transform_2, window_bounds = array<i64: 16, 1>}, {pipeline_mode = #tpu.pipeline_mode<synchronous>, transform_indices = @transform_3, window_bounds = array<i64: 32, 16>}, {pipeline_mode = #tpu.pipeline_mode<synchronous>, transform_indices = @transform_4, window_bounds = array<i64: 32, 1>}, {transform_indices = @transform_5, window_bounds = array<i64: 2, 32, 256>}]} {
    %c0 = arith.constant 0 : index
    %c0_0 = arith.constant 0 : index
    %0 = vector.load %arg3[%c0, %c0_0] : memref<16x32xf32, #tpu.memory_space<vmem>>, vector<16x32xf32>
    %c0_1 = arith.constant 0 : index
    %c0_2 = arith.constant 0 : index
    %1 = vector.load %arg4[%c0_1, %c0_2] : memref<16x1xf32, #tpu.memory_space<vmem>>, vector<16x1xf32>
    %c0_3 = arith.constant 0 : index
    %c0_4 = arith.constant 0 : index
    %2 = vector.load %arg5[%c0_3, %c0_4] : memref<32x16xf32, #tpu.memory_space<vmem>>, vector<32x16xf32>
    %c0_5 = arith.constant 0 : index
    %c0_6 = arith.constant 0 : index
    %3 = vector.load %arg6[%c0_5, %c0_6] : memref<32x1xf32, #tpu.memory_space<vmem>>, vector<32x1xf32>
    %c0_7 = arith.constant 0 : index
    %c0_8 = arith.constant 0 : index
    %c0_9 = arith.constant 0 : index
    %4 = vector.load %arg2[%c0_7, %c0_8, %c0_9] : memref<2x32x256xf32, #tpu.memory_space<vmem>>, vector<1x32x256xf32>
    %5 = vector.shape_cast %4 : vector<1x32x256xf32> to vector<32x256xf32>
    %cst = arith.constant dense<0.000000e+00> : vector<16x256xf32>
    %6 = tpu.matmul %0, %5, %cst {dimension_numbers = #tpu.dot_dimension_numbers<[1], [0], [0], [1], [0, 0, 1, 1], [], []>} : vector<16x32xf32>, vector<32x256xf32>, vector<16x256xf32> -> vector<16x256xf32>
    %7 = vector.broadcast %1 : vector<16x1xf32> to vector<16x256xf32>
    %8 = arith.addf %6, %7 : vector<16x256xf32>
    %cst_10 = arith.constant 0.000000e+00 : f32
    %9 = vector.broadcast %cst_10 : f32 to vector<16x256xf32>
    %10 = arith.maximumf %8, %9 : vector<16x256xf32>
    %cst_11 = arith.constant dense<0.000000e+00> : vector<32x256xf32>
    %11 = tpu.matmul %2, %10, %cst_11 {dimension_numbers = #tpu.dot_dimension_numbers<[1], [0], [0], [1], [0, 0, 1, 1], [], []>} : vector<32x16xf32>, vector<16x256xf32>, vector<32x256xf32> -> vector<32x256xf32>
    %12 = vector.broadcast %3 : vector<32x1xf32> to vector<32x256xf32>
    %13 = arith.addf %11, %12 : vector<32x256xf32>
    %c0_12 = arith.constant 0 : index
    %c0_13 = arith.constant 0 : index
    %c0_14 = arith.constant 0 : index
    %14 = vector.load %arg2[%c0_12, %c0_13, %c0_14] : memref<2x32x256xf32, #tpu.memory_space<vmem>>, vector<1x32x256xf32>
    %15 = vector.shape_cast %14 : vector<1x32x256xf32> to vector<32x256xf32>
    %16 = arith.addf %15, %13 : vector<32x256xf32>
    %cst_15 = arith.constant 0.000000e+00 : f32
    %17 = vector.broadcast %cst_15 : f32 to vector<32x256xf32>
    %18 = arith.maximumf %16, %17 : vector<32x256xf32>
    %c0_16 = arith.constant 0 : index
    %c0_17 = arith.constant 0 : index
    %c0_18 = arith.constant 0 : index
    %19 = vector.load %arg7[%c0_16, %c0_17, %c0_18] : memref<2x32x256xf32, #tpu.memory_space<vmem>>, vector<1x32x256xf32>
    %20 = vector.shape_cast %19 : vector<1x32x256xf32> to vector<32x256xf32>
    %21 = vector.shape_cast %18 : vector<32x256xf32> to vector<1x32x256xf32>
    tpu.vector_store %arg7[%c0_16, %c0_17, %c0_18], %21 {strides = array<i32>} : memref<2x32x256xf32, #tpu.memory_space<vmem>>, vector<1x32x256xf32>,
    %c1 = arith.constant 1 : index
    %c0_19 = arith.constant 0 : index
    %c0_20 = arith.constant 0 : index
    %22 = vector.load %arg2[%c1, %c0_19, %c0_20] : memref<2x32x256xf32, #tpu.memory_space<vmem>>, vector<1x32x256xf32>
    %23 = vector.shape_cast %22 : vector<1x32x256xf32> to vector<32x256xf32>
    %cst_21 = arith.constant dense<0.000000e+00> : vector<16x256xf32>
    %24 = tpu.matmul %0, %23, %cst_21 {dimension_numbers = #tpu.dot_dimension_numbers<[1], [0], [0], [1], [0, 0, 1, 1], [], []>} : vector<16x32xf32>, vector<32x256xf32>, vector<16x256xf32> -> vector<16x256xf32>
    %25 = vector.broadcast %1 : vector<16x1xf32> to vector<16x256xf32>
    %26 = arith.addf %24, %25 : vector<16x256xf32>
    %cst_22 = arith.constant 0.000000e+00 : f32
    %27 = vector.broadcast %cst_22 : f32 to vector<16x256xf32>
    %28 = arith.maximumf %26, %27 : vector<16x256xf32>
    %cst_23 = arith.constant dense<0.000000e+00> : vector<32x256xf32>
    %29 = tpu.matmul %2, %28, %cst_23 {dimension_numbers = #tpu.dot_dimension_numbers<[1], [0], [0], [1], [0, 0, 1, 1], [], []>} : vector<32x16xf32>, vector<16x256xf32>, vector<32x256xf32> -> vector<32x256xf32>
    %30 = vector.broadcast %3 : vector<32x1xf32> to vector<32x256xf32>
    %31 = arith.addf %29, %30 : vector<32x256xf32>
    %c1_24 = arith.constant 1 : index
    %c0_25 = arith.constant 0 : index
    %c0_26 = arith.constant 0 : index
    %32 = vector.load %arg2[%c1_24, %c0_25, %c0_26] : memref<2x32x256xf32, #tpu.memory_space<vmem>>, vector<1x32x256xf32>
    %33 = vector.shape_cast %32 : vector<1x32x256xf32> to vector<32x256xf32>
    %34 = arith.addf %33, %31 : vector<32x256xf32>
    %cst_27 = arith.constant 0.000000e+00 : f32
    %35 = vector.broadcast %cst_27 : f32 to vector<32x256xf32>
    %36 = arith.maximumf %34, %35 : vector<32x256xf32>
    %c1_28 = arith.constant 1 : index
    %c0_29 = arith.constant 0 : index
    %c0_30 = arith.constant 0 : index
    %37 = vector.load %arg7[%c1_28, %c0_29, %c0_30] : memref<2x32x256xf32, #tpu.memory_space<vmem>>, vector<1x32x256xf32>
    %38 = vector.shape_cast %37 : vector<1x32x256xf32> to vector<32x256xf32>
    %39 = vector.shape_cast %36 : vector<32x256xf32> to vector<1x32x256xf32>
    tpu.vector_store %arg7[%c1_28, %c0_29, %c0_30], %39 {strides = array<i32>} : memref<2x32x256xf32, #tpu.memory_space<vmem>>, vector<1x32x256xf32>,
    return
  }
  func.func @transform_0(%arg0: i32, %arg1: i32) -> (i32, i32, i32) {
    %c0_i32 = arith.constant 0 : i32
    %c0_i32_0 = arith.constant 0 : i32
    return %arg0, %c0_i32, %arg1 : i32, i32, i32
  }
  func.func @transform_1(%arg0: i32, %arg1: i32) -> (i32, i32) {
    %c0_i32 = arith.constant 0 : i32
    %c0_i32_0 = arith.constant 0 : i32
    %c0_i32_1 = arith.constant 0 : i32
    return %c0_i32, %c0_i32_0 : i32, i32
  }
  func.func @transform_2(%arg0: i32, %arg1: i32) -> (i32, i32) {
    %c0_i32 = arith.constant 0 : i32
    %c0_i32_0 = arith.constant 0 : i32
    %c0_i32_1 = arith.constant 0 : i32
    return %c0_i32, %c0_i32_0 : i32, i32
  }
  func.func @transform_3(%arg0: i32, %arg1: i32) -> (i32, i32) {
    %c0_i32 = arith.constant 0 : i32
    %c0_i32_0 = arith.constant 0 : i32
    %c0_i32_1 = arith.constant 0 : i32
    return %c0_i32, %c0_i32_0 : i32, i32
  }
  func.func @transform_4(%arg0: i32, %arg1: i32) -> (i32, i32) {
    %c0_i32 = arith.constant 0 : i32
    %c0_i32_0 = arith.constant 0 : i32
    %c0_i32_1 = arith.constant 0 : i32
    return %c0_i32, %c0_i32_0 : i32, i32
  }
  func.func @transform_5(%arg0: i32, %arg1: i32) -> (i32, i32, i32) {
    %c0_i32 = arith.constant 0 : i32
    %c0_i32_0 = arith.constant 0 : i32
    return %arg0, %c0_i32, %arg1 : i32, i32, i32
  }
}

</mosaic_0001>

<bundles_post_ra>
// kernel: tpu_custom_call.1
= control target key start
LH: loop header
LB: loop body
LE: loop exit
PB: predicated region body
PF: predicated region fallthrough
CT: control target
= control target key end

     0   :  { %10 = vsyncpa [#allocation3], 0  ;;  %s804_s0 = inlined_call_operand.hbm [shape: f32[2,32,256], index: 0, kind: input, shape index: {}]   ;;  %s805_s1 = inlined_call_operand.vmem [shape: f32[16,32], index: 1, kind: input, shape index: {}]   ;;  %s806_s2 = inlined_call_operand.vmem [shape: f32[16,1], index: 2, kind: input, shape index: {}]   ;;  %s807_s3 = inlined_call_operand.vmem [shape: f32[32,16], index: 3, kind: input, shape index: {}]   ;;  %s808_s4 = inlined_call_operand.vmem [shape: f32[32,1], index: 4, kind: input, shape index: {}]   ;;  %s809_s5 = inlined_call_operand.hbm [shape: f32[2,32,256], index: 5, kind: output, shape index: {}]  }
   0x1   :  { %11 = vsyncpa [#allocation4], 0  ;;  %s614_s18 = smov [#allocation2]   ;;  %s566_s22 = scalar_lea.hbm %s804_s0, 2048 }
   0x2   :  { %s17_s19 = sshll.u32 %s614_s18, 4  ;;  %p567_p0 = scmp.ne.s32.totalorder %s804_s0, %s566_s22  ;;  %s18_s19 = int_to_ptr.vmem [resolvable:$true] %s17_s19 }
   0x3   :  { %p570_p1 = scmp.lt.u32.totalorder %s566_s22, %s804_s0 }
   0x5   :  { %p572_p2 = pnand %p570_p1, %p567_p0 }
   0x7   :  { %575 = shalt.err (!%p572_p2)
}
   0x8   :  { %s576_s27 = scalar_lea.vmem %s18_s19, 2048  ;;  %p581_p4 = scmp.lt.s32.totalorder %s18_s19, %s18_s19 }
   0x9   :  { %p577_p3 = scmp.ne.s32.totalorder %s18_s19, %s576_s27  ;;  %p582_p5 = scmp.lt.s32.totalorder %s576_s27, %s576_s27 }
   0xb   :  { %p583_p6 = por %p582_p5, %p581_p4 }
   0xd   :  { %p584_p7 = pnand %p583_p6, %p577_p3 }
   0xf   :  { %587 = shalt.err (!%p584_p7)
}
  0x10   :  { %s615_s28 = smov 256   ;;  %s616_s29 = smov 16  }
  0x11   :  { %23 = dma.hbm_to_vmem [thread:$0]  %s804_s0, 2048, %s18_s19, [#allocation3], %s615_s28, %s615_s28, %s616_s29  }
  0x12   :  { %610 = dma.done.wait [#allocation3], 2048  }
  0x13   :  { %611 = vsyncadd [#allocation3], 4294965248  ;;  %v617_v0 = vmov 0.0   ;;  %v618_v1 = vmov 0   ;;  %v667_v2 = vld [vmem:[#allocation2 + $0x8] sm:$0xff]  ;;  %v669_v3 = vld [vmem:[#allocation2 + $0x18] sm:$0xff] }
  0x14   :  { %136 = vmatprep.mubr.f32.mxu0 %v617_v0  ;;  %564 = vset.pattern.permute.xlu0 %v618_v1  ;;  %v671_v4 = vld [vmem:[#allocation2] sm:$0xff]  ;;  %v532_v5 = vpack.c.bf16 %v669_v3, %v667_v2  ;;  %v675_v6 = vld [vmem:[#allocation2 + $0x10] sm:$0xff]  ;;  %v677_v7 = vld [vmem:[#allocation2 + $0x28] sm:$0xff]  ;;  %vm65_vm0 = vcmask 261120   ;;  %vm173_vm1 = vcmask 130048  }
  0x15   :  { %250 = vmatprep.mubr.f32.mxu1 %v617_v0  ;;  %565 = vset.pattern.permute.xlu1 %v618_v1  ;;  %v679_v8 = vld [vmem:[#allocation2 + $0x38] sm:$0xff]  ;;  %v534_v9 = vpack.c.bf16 %v675_v6, %v671_v4  ;;  %v685_v11 = vld [vmem:[#allocation2 + $0x20] sm:$0xff]  ;;  %v687_v12 = vld [vmem:[#allocation2 + $0x30] sm:$0xff] }
  0x16   :  { %v536_v10 = vpack.c.bf16 %v679_v8, %v677_v7  ;;  %533 = vmatprep.subr.bf16.mxu0 %v532_v5  ;;  %v689_v13 = vld [vmem:[#allocation2 + $0x48] sm:$0xff]  ;;  %v691_v14 = vld [vmem:[#allocation2 + $0x58] sm:$0xff]  ;;  %v538_v15 = vpack.c.bf16 %v687_v12, %v685_v11  ;;  %v697_v17 = vld [vmem:[#allocation2 + $0x40] sm:$0xff] }
  0x17   :  { %535 = vmatpush1.bf16.msra.mxu0 %v534_v9  ;;  %v544_v16 = vpack.c.bf16 %v691_v14, %v689_v13  ;;  %v699_v18 = vld [vmem:[#allocation2 + $0x50] sm:$0xff]  ;;  %v701_v19 = vld [vmem:[#allocation2 + $0x68] sm:$0xff]  ;;  %v703_v20 = vld [vmem:[#allocation2 + $0x78] sm:$0xff] }
  0x18   :  { %537 = vmatprep.subr.bf16.mxu0 %v536_v10  ;;  %v37_v21 = vld [vmem:[%s806_s2] sm:$0xff]  ;;  %v546_v23 = vpack.c.bf16 %v699_v18, %v697_v17  ;;  %v38_v24 = vld [vmem:[%s806_s2 + $0x8] sm:$0xff]  ;;  %v548_v25 = vpack.c.bf16 %v703_v20, %v701_v19  ;;  %v720_v27 = vld [vmem:[#allocation2 + $0x70] sm:$0xff] }
  0x19   :  { %57 = vperm.xlu0 %564, %v37_v21   ;;  %v35_v22 = vld [vmem:[%s805_s1] sm:$0xff]  ;;  %v36_v28 = vld [vmem:[%s805_s1 + $0x8] sm:$0xff]  ;;  %v45_v30 = vld [vmem:[%s808_s4 + $0x10] sm:$0xff] }
  0x1a   :  { %v718_v26 = vld [vmem:[#allocation2 + $0x60] sm:$0xff]  ;;  %v44_v32 = vld [vmem:[%s808_s4 + $0x8] sm:$0xff]  ;;  %v46_v33 = vld [vmem:[%s808_s4 + $0x18] sm:$0xff] }
  0x1b   :  { %539 = vmatpush1.bf16.msra.mxu0 %v538_v15  ;;  %v550_v29 = vpack.c.bf16 %v720_v27, %v718_v26  ;;  %v43_v31 = vld [vmem:[%s808_s4] sm:$0xff]  ;;  %v40_v1 = vld [vmem:[%s807_s3 + $0x8] sm:$0xff]  ;;  %v41_v9 = vld [vmem:[%s807_s3 + $0x10] sm:$0xff] }
  0x1c   :  { %545 = vmatprep.subr.bf16.mxu0 %v544_v16  ;;  %155 = vperm.xlu1 %565, %v43_v31   ;;  %v39_v57 = vld [vmem:[%s807_s3] sm:$0xff]  ;;  %v42_v10 = vld [vmem:[%s807_s3 + $0x18] sm:$0xff]  ;;  %s619_s3 = smov [#allocation5]  }
  0x1d   :  { %62 = vperm.xlu0 %564, %v38_v24   ;;  %s508_s27 = sshll.u32 %s619_s3, 4  ;;  %s509_s27 = int_to_ptr.vmem [resolvable:$true] %s508_s27 }
  0x1e   :  { %520 = vmatmul.mubr.msk.f32.vlgmr.msra.gmra.mrb[0].mxu0 %vm65_vm0, %v35_v22  ;;  %s588_s30 = scalar_lea.vmem %s509_s27, 2048  ;;  %p593_p9 = scmp.lt.s32.totalorder %s509_s27, %s509_s27 }
  0x1f   :  { %547 = vmatpush1.bf16.msra.mxu0 %v546_v23  ;;  %142 = vmatprep.mubr.f32.mxu0 %v617_v0  ;;  %p589_p8 = scmp.ne.s32.totalorder %s509_s27, %s588_s30  ;;  %p594_p10 = scmp.lt.s32.totalorder %s588_s30, %s588_s30 }
  0x20   :  { %549 = vmatprep.subr.bf16.mxu0 %v548_v25  ;;  %160 = vperm.xlu1 %565, %v44_v32  }
  0x21   :  { %165 = vperm.xlu0 %564, %v45_v30   ;;  %p595_p11 = por %p594_p10, %p593_p9 }
  0x22   :  { %521 = vmatmul.mubr.msk.f32.gmra.mrb[2].mxu0 %vm65_vm0, %v36_v28 }
  0x23   :  { %551 = vmatpush1.bf16.msra.mxu0 %v550_v29  ;;  %372 = vmatprep.mubr.f32.mxu0 %v617_v0  ;;  %p596_p12 = pnand %p595_p11, %p589_p8 }
  0x24   :  { %170 = vperm.xlu1 %565, %v46_v33  }
  0x26   :  { %526 = vmatmul.mubr.msk.f32.vlgmr.msra.gmra.mrb[4].mxu0 %vm65_vm0, %v35_v22 }
  0x27   :  { %378 = vmatprep.mubr.f32.mxu0 %v617_v0 }
  0x2a   :  { %527 = vmatmul.mubr.msk.f32.gmra.mrb[6].mxu0 %vm65_vm0, %v36_v28 }
  0x2b   :  { %453 = vmatprep.mubr.f32.mxu0 %v617_v0 }
  0x98   :  { %v58_v34 = vpop.permute.xlu0 %57 }
  0x9b   :  { %v156_v15 = vpop.permute.xlu1 %155 }
  0x9c   :  { %v63_v38 = vpop.permute.xlu0 %62 }
  0x9f   :  { %v161_v24 = vpop.permute.xlu1 %160 }
  0xf1   :  { %v138_v35 = vpop.f32.mrb[0].mxu0 }
  0xf2   :  { %v140_v36 = vpop.f32.mrb[1].mxu0  ;;  %v139_v37 = vadd.f32 %v138_v35, %v58_v34  ;;  %v166_v35 = vpop.permute.xlu0 %165 }
  0xf3   :  { %v141_v39 = vadd.f32 %v140_v36, %v58_v34 }
  0xf4   :  { %v149_v44 = vmax.f32 %v139_v37, 0.0 }
  0xf5   :  { %v144_v40 = vpop.f32.mrb[2].mxu0  ;;  %v150_v46 = vmax.f32 %v141_v39, 0.0 }
  0xf6   :  { %v145_v41 = vadd.f32 %v144_v40, %v63_v38  ;;  %v146_v42 = vpop.f32.mrb[3].mxu0 }
  0xf7   :  { %v147_v43 = vadd.f32 %v146_v42, %v63_v38 }
  0xf8   :  { %v151_v45 = vmax.f32 %v145_v41, 0.0 }
  0xf9   :  { %v152_v47 = vmax.f32 %v147_v43, 0.0  ;;  %v374_v48 = vpop.f32.mrb[4].mxu0 }
  0xfa   :  { %v376_v49 = vpop.f32.mrb[5].mxu0  ;;  %v542_v50 = vpack.c.bf16 %v151_v45, %v149_v44  ;;  %v375_v52 = vadd.f32 %v374_v48, %v58_v34  ;;  %v171_v44 = vpop.permute.xlu1 %170 }
  0xfb   :  { %v540_v51 = vpack.c.bf16 %v152_v47, %v150_v46  ;;  %v377_v53 = vadd.f32 %v376_v49, %v58_v34 }
  0xfc   :  { %v385_v59 = vmax.f32 %v375_v52, 0.0 }
  0xfd   :  { %541 = vmatprep.subr.bf16.mxu1 %v540_v51  ;;  %v380_v54 = vpop.f32.mrb[6].mxu0  ;;  %v386_v61 = vmax.f32 %v377_v53, 0.0 }
  0xfe   :  { %v381_v55 = vadd.f32 %v380_v54, %v63_v38  ;;  %543 = vmatpush1.bf16.msra.mxu1 %v542_v50  ;;  %v382_v56 = vpop.f32.mrb[7].mxu0 }
  0xff   :  { %v383_v58 = vadd.f32 %v382_v56, %v63_v38 }
 0x100   :  { %v387_v60 = vmax.f32 %v381_v55, 0.0 }
 0x101   :  { %v388_v62 = vmax.f32 %v383_v58, 0.0  ;;  %522 = vmatmul.mubr.msk.f32.vlgmr.msra.gmra.mrb[0].mxu1 %vm173_vm1, %v39_v57 }
 0x102   :  { %v554_v63 = vpack.c.bf16 %v387_v60, %v385_v59  ;;  %256 = vmatprep.mubr.f32.mxu1 %v617_v0 }
 0x103   :  { %v552_v5 = vpack.c.bf16 %v388_v62, %v386_v61 }
 0x105   :  { %523 = vmatmul.mubr.msk.f32.gmra.mrb[2].mxu1 %vm173_vm1, %v40_v1  ;;  %553 = vmatprep.subr.bf16.mxu0 %v552_v5 }
 0x106   :  { %556 = vmatprep.subr.bf16.mxu1 %v552_v5  ;;  %555 = vmatpush1.bf16.msra.mxu0 %v554_v63 }
 0x107   :  { %557 = vmatpush1.bf16.msra.mxu1 %v554_v63  ;;  %262 = vmatprep.mubr.f32.mxu1 %v617_v0 }
 0x109   :  { %524 = vmatmul.mubr.msk.f32.gmra.mrb[4].mxu1 %vm173_vm1, %v41_v9  ;;  %528 = vmatmul.mubr.msk.f32.vlgmr.msra.gmra.mrb[8].mxu0 %vm173_vm1, %v39_v57 }
 0x10a   :  { %268 = vmatprep.mubr.f32.mxu1 %v617_v0 }
 0x10d   :  { %525 = vmatmul.mubr.msk.f32.gmra.mrb[6].mxu1 %vm173_vm1, %v42_v10 }
 0x10e   :  { %459 = vmatprep.mubr.f32.mxu1 %v617_v0 }
 0x111   :  { %529 = vmatmul.mubr.msk.f32.vlgmr.msra.gmra.mrb[8].mxu1 %vm173_vm1, %v40_v1 }
 0x112   :  { %465 = vmatprep.mubr.f32.mxu1 %v617_v0 }
 0x115   :  { %530 = vmatmul.mubr.msk.f32.gmra.mrb[10].mxu1 %vm173_vm1, %v41_v9 }
 0x116   :  { %471 = vmatprep.mubr.f32.mxu1 %v617_v0 }
 0x119   :  { %531 = vmatmul.mubr.msk.f32.gmra.mrb[12].mxu1 %vm173_vm1, %v42_v10 }
 0x1d4   :  { %v252_v16 = vpop.f32.mrb[0].mxu1 }
 0x1d5   :  { %v253_v21 = vadd.f32 %v252_v16, %v156_v15  ;;  %v254_v22 = vpop.f32.mrb[1].mxu1 }
 0x1d6   :  { %v255_v23 = vadd.f32 %v254_v22, %v156_v15 }
 0x1d7   :  { %v275_v25 = vadd.f32 %v253_v21, %v671_v4 }
 0x1d8   :  { %v276_v28 = vadd.f32 %v255_v23, %v667_v2  ;;  %v258_v29 = vpop.f32.mrb[2].mxu1 }
 0x1d9   :  { %v283_v30 = vmax.f32 %v275_v25, 0.0  ;;  %v260_v31 = vpop.f32.mrb[3].mxu1  ;;  %v259_v32 = vadd.f32 %v258_v29, %v161_v24 }
 0x1da   :  { %v284_v33 = vmax.f32 %v276_v28, 0.0  ;;  %v261_v34 = vadd.f32 %v260_v31, %v161_v24 }
 0x1db   :  { %291 = vst [vmem:[#allocation5] sm:$0xff] %v283_v30  ;;  %v277_v0 = vadd.f32 %v259_v32, %v675_v6 }
 0x1dc   :  { %292 = vst [vmem:[#allocation5 + $0x8] sm:$0xff] %v284_v33  ;;  %v264_v36 = vpop.f32.mrb[4].mxu1  ;;  %v278_v37 = vadd.f32 %v261_v34, %v669_v3  ;;  %v455_v38 = vpop.f32.mrb[8].mxu0 }
 0x1dd   :  { %v265_v39 = vadd.f32 %v264_v36, %v166_v35  ;;  %v285_v40 = vmax.f32 %v277_v0, 0.0  ;;  %v266_v4 = vpop.f32.mrb[5].mxu1  ;;  %v456_v41 = vadd.f32 %v455_v38, %v156_v15  ;;  %v457_v2 = vpop.f32.mrb[9].mxu0 }
 0x1de   :  { %v286_v42 = vmax.f32 %v278_v37, 0.0  ;;  %v267_v43 = vadd.f32 %v266_v4, %v166_v35  ;;  %v458_v45 = vadd.f32 %v457_v2, %v156_v15 }
 0x1df   :  { %v279_v46 = vadd.f32 %v265_v39, %v685_v11  ;;  %293 = vst [vmem:[#allocation5 + $0x10] sm:$0xff] %v285_v40  ;;  %v478_v47 = vadd.f32 %v456_v41, %v697_v17 }
 0x1e0   :  { %294 = vst [vmem:[#allocation5 + $0x18] sm:$0xff] %v286_v42  ;;  %v280_v6 = vadd.f32 %v267_v43, %v677_v7  ;;  %v270_v48 = vpop.f32.mrb[6].mxu1  ;;  %v479_v3 = vadd.f32 %v458_v45, %v689_v13 }
 0x1e1   :  { %v287_v49 = vmax.f32 %v279_v46, 0.0  ;;  %v271_v50 = vadd.f32 %v270_v48, %v171_v44  ;;  %v272_v51 = vpop.f32.mrb[7].mxu1  ;;  %v486_v52 = vmax.f32 %v478_v47, 0.0 }
 0x1e2   :  { %v288_v53 = vmax.f32 %v280_v6, 0.0  ;;  %v273_v54 = vadd.f32 %v272_v51, %v171_v44  ;;  %v487_v55 = vmax.f32 %v479_v3, 0.0 }
 0x1e3   :  { %295 = vst [vmem:[#allocation5 + $0x20] sm:$0xff] %v287_v49  ;;  %v281_v56 = vadd.f32 %v271_v50, %v687_v12  ;;  %495 = vst [vmem:[#allocation5 + $0x40] sm:$0xff] %v486_v52 }
 0x1e4   :  { %296 = vst [vmem:[#allocation5 + $0x28] sm:$0xff] %v288_v53  ;;  %v282_v11 = vadd.f32 %v273_v54, %v679_v8  ;;  %v461_v17 = vpop.f32.mrb[8].mxu1  ;;  %496 = vst [vmem:[#allocation5 + $0x48] sm:$0xff] %v487_v55 }
 0x1e5   :  { %v289_v7 = vmax.f32 %v281_v56, 0.0  ;;  %v462_v57 = vadd.f32 %v461_v17, %v161_v24  ;;  %v463_v58 = vpop.f32.mrb[9].mxu1 }
 0x1e6   :  { %v290_v13 = vmax.f32 %v282_v11, 0.0  ;;  %v464_v59 = vadd.f32 %v463_v58, %v161_v24 }
 0x1e7   :  { %297 = vst [vmem:[#allocation5 + $0x30] sm:$0xff] %v289_v7  ;;  %v480_v60 = vadd.f32 %v462_v57, %v699_v18 }
 0x1e8   :  { %298 = vst [vmem:[#allocation5 + $0x38] sm:$0xff] %v290_v13  ;;  %v481_v61 = vadd.f32 %v464_v59, %v691_v14  ;;  %v467_v62 = vpop.f32.mrb[10].mxu1 }
 0x1e9   :  { %v488_v63 = vmax.f32 %v480_v60, 0.0  ;;  %v468_v12 = vadd.f32 %v467_v62, %v166_v35  ;;  %v469_v1 = vpop.f32.mrb[11].mxu1 }
 0x1ea   :  { %v489_v5 = vmax.f32 %v481_v61, 0.0  ;;  %v470_v9 = vadd.f32 %v469_v1, %v166_v35 }
 0x1eb   :  { %497 = vst [vmem:[#allocation5 + $0x50] sm:$0xff] %v488_v63  ;;  %v482_v8 = vadd.f32 %v468_v12, %v718_v26 }
 0x1ec   :  { %498 = vst [vmem:[#allocation5 + $0x58] sm:$0xff] %v489_v5  ;;  %v483_v10 = vadd.f32 %v470_v9, %v701_v19  ;;  %v473_v15 = vpop.f32.mrb[12].mxu1 }
 0x1ed   :  { %v490_v16 = vmax.f32 %v482_v8, 0.0  ;;  %v474_v21 = vadd.f32 %v473_v15, %v171_v44  ;;  %v475_v22 = vpop.f32.mrb[13].mxu1 }
 0x1ee   :  { %v491_v18 = vmax.f32 %v483_v10, 0.0  ;;  %v476_v23 = vadd.f32 %v475_v22, %v171_v44 }
 0x1ef   :  { %499 = vst [vmem:[#allocation5 + $0x60] sm:$0xff] %v490_v16  ;;  %v484_v14 = vadd.f32 %v474_v21, %v720_v27 }
 0x1f0   :  { %500 = vst [vmem:[#allocation5 + $0x68] sm:$0xff] %v491_v18  ;;  %v485_v24 = vadd.f32 %v476_v23, %v703_v20 }
 0x1f1   :  { %v492_v25 = vmax.f32 %v484_v14, 0.0 }
 0x1f2   :  { %v493_v28 = vmax.f32 %v485_v24, 0.0 }
 0x1f3   :  { %501 = vst [vmem:[#allocation5 + $0x70] sm:$0xff] %v492_v25 }
 0x1f4   :  { %502 = vst [vmem:[#allocation5 + $0x78] sm:$0xff] %v493_v28 }
 0x1f5   :  { %599 = shalt.err (!%p596_p12)
}
 0x1f6   :  { %s600_s7 = scalar_lea.hbm %s809_s5, 2048 }
 0x1f7   :  { %p601_p13 = scmp.ne.s32.totalorder %s809_s5, %s600_s7  ;;  %p604_p0 = scmp.lt.u32.totalorder %s600_s7, %s809_s5 }
 0x1f9   :  { %p606_p1 = pnand %p604_p0, %p601_p13 }
 0x1fb   :  { %609 = shalt.err (!%p606_p1)
}
 0x1fc   :  { %514 = dma.vmem_to_hbm [thread:$0]  %s509_s27, 2048, %s809_s5, [#allocation4], %s615_s28, %s615_s28, %s616_s29  }
 0x1fd   :  { %612 = dma.done.wait [#allocation4], 2048  }
 0x1fe   :  { %613 = vsyncadd [#allocation4], 4294965248 }
 0x1ff   :  { %518 = vsyncpa [#allocation3], 1 }
 0x200   :  { %519 = vsyncpa [#allocation4], 1 }

</bundles_post_ra>
